<compile_context>
chip_gen: v5e
topology: v5e:2x2
jax: 0.10.0
libtpu: 0.0.40
codegen_flags: <defaults>
</compile_context>

<pallas_src>
import functools
import math

import numpy as np

import jax
import jax.numpy as jnp
from jax.experimental import pallas as pl
from jax.experimental.pallas import tpu as pltpu


# ------------------------------------------------------------------- utilities

def _round_up(x, m):
    return ((x + m - 1) // m) * m


def _largest_divisor(n, cap):
    for d in range(min(cap, n), 0, -1):
        if n % d == 0:
            return d
    return 1


_VMEM_LIMIT_CACHE = None


def _vmem_limit_bytes():
    """Scoped-VMEM request derived from the actual chip (64 MiB on v7x, 128 MiB v5e/v6e)."""
    global _VMEM_LIMIT_CACHE
    if _VMEM_LIMIT_CACHE is None:
        cap = 64 * 1024 * 1024
        try:
            cap = int(pltpu.get_tpu_info().vmem_capacity_bytes)
        except Exception:
            pass
        _VMEM_LIMIT_CACHE = max(32 * 1024 * 1024, min(int(cap * 0.7), 96 * 1024 * 1024))
    return _VMEM_LIMIT_CACHE


def _compiler_params(semantics):
    return pltpu.CompilerParams(dimension_semantics=semantics,
                                vmem_limit_bytes=_vmem_limit_bytes())


# ---------------------------------------------------------------- Pallas kernels

def _linear_kernel(x_ref, w_ref, b_ref, o_ref, *, act):
    x = x_ref[...].astype(jnp.bfloat16)
    w = w_ref[...].astype(jnp.bfloat16)
    y = jnp.dot(x, w, preferred_element_type=jnp.float32) + b_ref[...]
    if act == "silu":
        y = y * jax.nn.sigmoid(y)
    elif act == "relu":
        y = jnp.maximum(y, 0.0)
    o_ref[...] = y.astype(o_ref.dtype)


def pallas_linear(x2d, w, b, act="none", out_dtype=jnp.float32, bm=512):
    """y = x2d @ w + b (optionally fused SiLU/ReLU), row-tiled. x2d [M,K], w [K,N] (bf16)."""
    M, K = x2d.shape
    N = w.shape[1]
    bm = min(bm, _round_up(M, 8))
    Mp = _round_up(M, bm)
    xin = jnp.pad(x2d, ((0, Mp - M), (0, 0))) if Mp != M else x2d
    out = pl.pallas_call(
        functools.partial(_linear_kernel, act=act),
        grid=(Mp // bm,),
        in_specs=[pl.BlockSpec((bm, K), lambda i: (i, 0)),
                  pl.BlockSpec((K, N), lambda i: (0, 0)),
                  pl.BlockSpec((1, N), lambda i: (0, 0))],
        out_specs=pl.BlockSpec((bm, N), lambda i: (i, 0)),
        out_shape=jax.ShapeDtypeStruct((Mp, N), out_dtype),
        compiler_params=_compiler_params(("parallel",)),
    )(xin, w, b.reshape(1, N))
    return out[:M] if Mp != M else out


def seq_linear(x, w, b, act="none", out_dtype=jnp.float32):
    L, B, C = x.shape
    y = pallas_linear(x.reshape(L * B, C), w, b, act=act, out_dtype=out_dtype)
    return y.reshape(L, B, -1)


def _attn_kernel(q_ref, k_ref, v_ref, o_ref):
    q = q_ref[...].astype(jnp.bfloat16)
    k = k_ref[...].astype(jnp.bfloat16)
    s = jax.lax.dot_general(q, k, (((2,), (1,)), ((0,), (0,))),
                            preferred_element_type=jnp.float32)
    m = jnp.max(s, axis=-1, keepdims=True)
    p = jnp.exp(s - m)
    p = p * pl.reciprocal(jnp.sum(p, axis=-1, keepdims=True), approx=True)
    o = jax.lax.dot_general(p.astype(jnp.bfloat16), v_ref[...].astype(jnp.bfloat16),
                            (((2,), (1,)), ((0,), (0,))),
                            preferred_element_type=jnp.float32)
    o_ref[...] = o.astype(o_ref.dtype)


def pallas_attention(q, k, v, out_dtype=jnp.bfloat16, gb_target=8):
    """softmax(q @ k) @ v, gb heads per grid step. q [G,L,dk], k [G,dk,Lm], v [G,Lm,dh]."""
    G, L, dk = q.shape
    Lm = k.shape[2]
    dh = v.shape[2]
    gb = _largest_divisor(G, gb_target)   # divisor of G -> no padded-head waste
    return pl.pallas_call(
        _attn_kernel,
        grid=(G // gb,),
        in_specs=[pl.BlockSpec((gb, L, dk), lambda g: (g, 0, 0)),
                  pl.BlockSpec((gb, dk, Lm), lambda g: (g, 0, 0)),
                  pl.BlockSpec((gb, Lm, dh), lambda g: (g, 0, 0))],
        out_specs=pl.BlockSpec((gb, L, dh), lambda g: (g, 0, 0)),
        out_shape=jax.ShapeDtypeStruct((G, L, dh), out_dtype),
        compiler_params=_compiler_params(("parallel",)),
    )(q, k, v)


def _local_attn_kernel(q_ref, k_ref, v_ref, rel_ref, qpos_ref, kpos_ref, o_ref,
                       m_sc, l_sc, acc_sc, *, max_dis, dilation, win, h, w, neg):
    ki = pl.program_id(2)

    @pl.when(ki == 0)
    def _init():
        m_sc[...] = jnp.full_like(m_sc, -jnp.inf)
        l_sc[...] = jnp.zeros_like(l_sc)
        acc_sc[...] = jnp.zeros_like(acc_sc)

    q = q_ref[...].astype(jnp.bfloat16)
    k = k_ref[...].astype(jnp.bfloat16)
    s = jax.lax.dot_general(q, k, (((2,), (1,)), ((0,), (0,))),
                            preferred_element_type=jnp.float32)          # [gb, tq, tk]
    gb, tq, tk = s.shape

    # -------- in-kernel relative-position bias + window mask (no O(hw^2) HBM tensor)
    qy = qpos_ref[:, 0:1]                      # [tq, 1] int32
    qx = qpos_ref[:, 1:2]
    ky = kpos_ref[0:1, :]                      # [1, tk] int32 (padded keys marked "far away")
    kx = kpos_ref[1:2, :]
    dy = qy - ky                               # [tq, tk]
    dx = qx - kx

    rel = rel_ref[...].astype(jnp.float32)     # [gb, tq, win*win padded]

    def tap_range(extent):                     # only offsets that can occur inside the image
        lo = max(0, max_dis - (extent - 1) // dilation)
        hi = min(win - 1, max_dis + (extent - 1) // dilation)
        return range(lo, hi + 1)

    col_match = {b: (dx == (b - max_dis) * dilation) for b in tap_range(w)}
    bias = jnp.full((gb, tq, tk), neg, jnp.float32)
    for a in tap_range(h):
        row_match = (dy == (a - max_dis) * dilation)
        inner = jnp.full((gb, tq, tk), neg, jnp.float32)
        for b, cm in col_match.items():
            t = a * win + b
            inner = jnp.where(cm[None], rel[:, :, t][:, :, None], inner)
        bias = jnp.where(row_match[None], inner, bias)
    s = s + bias

    # -------- online softmax
    m_prev = m_sc[...]
    m_new = jnp.maximum(m_prev, jnp.max(s, axis=-1, keepdims=True))
    alpha = jnp.exp(m_prev - m_new)
    p = jnp.exp(s - m_new)
    l_sc[...] = alpha * l_sc[...] + jnp.sum(p, axis=-1, keepdims=True)
    acc_sc[...] = alpha * acc_sc[...] + jax.lax.dot_general(
        p.astype(jnp.bfloat16), v_ref[...].astype(jnp.bfloat16),
        (((2,), (1,)), ((0,), (0,))), preferred_element_type=jnp.float32)
    m_sc[...] = m_new

    @pl.when(ki == pl.num_programs(2) - 1)
    def _finalize():
        o_ref[...] = (acc_sc[...] * pl.reciprocal(l_sc[...], approx=True)).astype(o_ref.dtype)


def pallas_local_attention(q, k, v, rel, *, h, w, max_dis, dilation,
                           out_dtype=jnp.bfloat16, gb_target=8):
    """Flash-style windowed attention with in-kernel relative-position bias.

    q [G,hw,dk], k [G,dk,hw], v [G,hw,dh], rel [G,hw,win^2 padded]."""
    G, hw, dk = q.shape
    dh = v.shape[2]
    winp = rel.shape[2]
    win = 2 * max_dis + 1
    if hw <= 512:
        tq = tk = hw
        hw_p = hw
    else:
        tq, tk = 128, 256
        hw_p = _round_up(hw, 256)
    if hw_p != hw:
        pad = hw_p - hw
        q = jnp.pad(q, ((0, 0), (0, pad), (0, 0)))
        k = jnp.pad(k, ((0, 0), (0, 0), (0, pad)))
        v = jnp.pad(v, ((0, 0), (0, pad), (0, 0)))
        rel = jnp.pad(rel, ((0, 0), (0, pad), (0, 0)))

    idx = jnp.arange(hw_p, dtype=jnp.int32)
    far = jnp.int32(10 ** 6)                 # padded positions never fall inside any window
    yy = jnp.where(idx < hw, idx // w, far)
    xx = jnp.where(idx < hw, idx % w, far)
    qpos = jnp.stack([yy, xx], axis=1)       # [hw_p, 2]
    kpos = jnp.stack([yy, xx], axis=0)       # [2, hw_p]

    gb = _largest_divisor(G, gb_target)
    grid = (G // gb, hw_p // tq, hw_p // tk)
    out = pl.pallas_call(
        functools.partial(_local_attn_kernel, max_dis=max_dis, dilation=dilation,
                          win=win, h=h, w=w, neg=-1e9),
        grid=grid,
        in_specs=[pl.BlockSpec((gb, tq, dk), lambda g, qi, ki: (g, qi, 0)),
                  pl.BlockSpec((gb, dk, tk), lambda g, qi, ki: (g, 0, ki)),
                  pl.BlockSpec((gb, tk, dh), lambda g, qi, ki: (g, ki, 0)),
                  pl.BlockSpec((gb, tq, winp), lambda g, qi, ki: (g, qi, 0)),
                  pl.BlockSpec((tq, 2), lambda g, qi, ki: (qi, 0)),
                  pl.BlockSpec((2, tk), lambda g, qi, ki: (0, ki))],
        out_specs=pl.BlockSpec((gb, tq, dh), lambda g, qi, ki: (g, qi, 0)),
        out_shape=jax.ShapeDtypeStruct((G, hw_p, dh), out_dtype),
        scratch_shapes=[pltpu.VMEM((gb, tq, 1), jnp.float32),
                        pltpu.VMEM((gb, tq, 1), jnp.float32),
                        pltpu.VMEM((gb, tq, dh), jnp.float32)],
        compiler_params=_compiler_params(("parallel", "parallel", "arbitrary")),
    )(q, k, v, rel, qpos, kpos)
    return out[:, :hw] if hw_p != hw else out


def _layernorm_kernel(x_ref, g_ref, b_ref, o_ref):
    x = x_ref[...].astype(jnp.float32)
    mu = jnp.mean(x, axis=-1, keepdims=True)
    var = jnp.mean(jnp.square(x - mu), axis=-1, keepdims=True)
    y = (x - mu) * jax.lax.rsqrt(var + 1e-5) * g_ref[...] + b_ref[...]
    o_ref[...] = y.astype(o_ref.dtype)


def pallas_layernorm(x, gamma, beta, out_dtype=jnp.float32, bm=1024):
    shp = x.shape
    C = shp[-1]
    x2 = x.reshape(-1, C)
    M = x2.shape[0]
    bm = min(bm, _round_up(M, 8))
    Mp = _round_up(M, bm)
    if Mp != M:
        x2 = jnp.pad(x2, ((0, Mp - M), (0, 0)))
    y = pl.pallas_call(
        _layernorm_kernel,
        grid=(Mp // bm,),
        in_specs=[pl.BlockSpec((bm, C), lambda i: (i, 0)),
                  pl.BlockSpec((1, C), lambda i: (0, 0)),
                  pl.BlockSpec((1, C), lambda i: (0, 0))],
        out_specs=pl.BlockSpec((bm, C), lambda i: (i, 0)),
        out_shape=jax.ShapeDtypeStruct((Mp, C), out_dtype),
        compiler_params=_compiler_params(("parallel",)),
    )(x2, gamma.reshape(1, C), beta.reshape(1, C))
    if Mp != M:
        y = y[:M]
    return y.reshape(shp)


def _gn_kernel(x_ref, p_ref, g_ref, b_ref, o_ref, *, inv_n, act):
    x = x_ref[0].astype(jnp.float32)                               # [S, C]
    pmat = p_ref[...]                                              # [C, C] group indicator
    mean_c = jnp.dot(jnp.sum(x, axis=0, keepdims=True), pmat,
                     preferred_element_type=jnp.float32) * inv_n   # [1, C]
    d = x - mean_c
    var_c = jnp.dot(jnp.sum(d * d, axis=0, keepdims=True), pmat,
                    preferred_element_type=jnp.float32) * inv_n
    y = d * jax.lax.rsqrt(var_c + 1e-5) * g_ref[...] + b_ref[...]
    if act == "relu":
        y = jnp.maximum(y, 0.0)
    o_ref[0] = y


@functools.lru_cache(maxsize=None)
def _group_indicator_np(C, groups):
    cg = C // groups
    m = np.zeros((C, C), np.float32)
    for g in range(groups):
        m[g * cg:(g + 1) * cg, g * cg:(g + 1) * cg] = 1.0
    return m


def pallas_groupnorm_rows(x3, gamma, beta, groups, act="none"):
    """GroupNorm over [N, S, C]: stats per (n, channel-group) over all S rows; affine+ReLU fused."""
    N, S, C = x3.shape
    P = jnp.asarray(_group_indicator_np(C, groups))
    inv_n = 1.0 / float((C // groups) * S)
    return pl.pallas_call(
        functools.partial(_gn_kernel, inv_n=inv_n, act=act),
        grid=(N,),
        in_specs=[pl.BlockSpec((1, S, C), lambda n: (n, 0, 0)),
                  pl.BlockSpec((C, C), lambda n: (0, 0)),
                  pl.BlockSpec((1, C), lambda n: (0, 0)),
                  pl.BlockSpec((1, C), lambda n: (0, 0))],
        out_specs=pl.BlockSpec((1, S, C), lambda n: (n, 0, 0)),
        out_shape=jax.ShapeDtypeStruct((N, S, C), jnp.float32),
        compiler_params=_compiler_params(("parallel",)),
    )(x3, P, gamma.reshape(1, C), beta.reshape(1, C))


def groupnorm_nhwc(x, gamma, beta, groups, act="none"):
    N, H, W, C = x.shape
    y = pallas_groupnorm_rows(x.reshape(N, H * W, C), gamma, beta, groups, act=act)
    return y.reshape(N, H, W, C)


def groupnorm_1d(x_seq, gamma, beta, groups):
    # torch GroupNorm1D: [L,B,C] -> permute(1,2,0) -> GroupNorm -> permute back
    y = pallas_groupnorm_rows(x_seq.transpose(1, 0, 2), gamma, beta, groups)
    return y.transpose(1, 0, 2)


def _pick_row_tile(H, wpad, C, budget=2 * 1024 * 1024):
    for d in range(H, 0, -1):
        if H % d:
            continue
        if d * wpad * C * 4 <= budget and (d == H or (d * wpad) % 8 == 0):
            return d
    return H


def _conv3x3_kernel(x_ref, w_ref, b_ref, o_ref, *, wpad, mtile):
    t = pl.program_id(1)
    base = t * mtile
    if mtile % 8 == 0:
        base = pl.multiple_of(base, 8)
    cout = o_ref.shape[2]
    acc = jnp.zeros((mtile, cout), jnp.float32)
    for tap in range(9):           # bf16 slab: no per-tap casts of the overlapping slices
        i, j = divmod(tap, 3)
        xt = x_ref[0, pl.ds(base + i * wpad + j, mtile), :]
        acc = acc + jnp.dot(xt, w_ref[tap], preferred_element_type=jnp.float32)
    o_ref[0] = acc + b_ref[...]


def conv3x3_nhwc(x, w9, b):
    """3x3 conv, padding=1, NHWC, 9 accumulated row-shifted matmuls, row-tiled grid."""
    N, H, W, C = x.shape
    Cout = w9.shape[2]
    wpad = W + 2
    xp = jnp.pad(x.astype(jnp.bfloat16), ((0, 0), (1, 1), (1, 1), (0, 0)))
    x_flat = jnp.pad(xp.reshape(N, (H + 2) * wpad, C), ((0, 0), (0, 2), (0, 0)))
    rows_in = x_flat.shape[1]
    th = _pick_row_tile(H, wpad, Cout)
    mtile = th * wpad
    out = pl.pallas_call(
        functools.partial(_conv3x3_kernel, wpad=wpad, mtile=mtile),
        grid=(N, H // th),
        in_specs=[pl.BlockSpec((1, rows_in, C), lambda n, t: (n, 0, 0)),
                  pl.BlockSpec((9, C, Cout), lambda n, t: (0, 0, 0)),
                  pl.BlockSpec((1, Cout), lambda n, t: (0, 0))],
        out_specs=pl.BlockSpec((1, mtile, Cout), lambda n, t: (n, t, 0)),
        out_shape=jax.ShapeDtypeStruct((N, H * wpad, Cout), jnp.float32),
        compiler_params=_compiler_params(("parallel", "parallel")),
    )(x_flat, w9, b.reshape(1, Cout))
    return out.reshape(N, H, wpad, Cout)[:, :, :W, :]


def _dwconv5_kernel(x_ref, w_ref, b_ref, o_ref, *, wpad, mtile):
    t = pl.program_id(1)
    base = t * mtile
    if mtile % 8 == 0:
        base = pl.multiple_of(base, 8)
    acc = jnp.zeros((mtile, o_ref.shape[2]), jnp.float32)
    for tap in range(25):
        i, j = divmod(tap, 5)
        xt = x_ref[0, pl.ds(base + i * wpad + j, mtile), :]
        acc = acc + (xt * w_ref[tap:tap + 1, :]).astype(jnp.float32)
    o_ref[0] = acc + b_ref[...]


def pallas_dwconv5x5(x, w25, b):
    """Depthwise 5x5 conv, padding=2, NHWC, row-shifted bf16 products with f32 accumulation."""
    N, H, W, C = x.shape
    wpad = W + 4
    xp = jnp.pad(x.astype(jnp.bfloat16), ((0, 0), (2, 2), (2, 2), (0, 0)))
    x_flat = jnp.pad(xp.reshape(N, (H + 4) * wpad, C), ((0, 0), (0, 4), (0, 0)))
    rows_in = x_flat.shape[1]
    th = _pick_row_tile(H, wpad, C)
    mtile = th * wpad
    out = pl.pallas_call(
        functools.partial(_dwconv5_kernel, wpad=wpad, mtile=mtile),
        grid=(N, H // th),
        in_specs=[pl.BlockSpec((1, rows_in, C), lambda n, t: (n, 0, 0)),
                  pl.BlockSpec((25, C), lambda n, t: (0, 0)),
                  pl.BlockSpec((1, C), lambda n, t: (0, 0))],
        out_specs=pl.BlockSpec((1, mtile, C), lambda n, t: (n, t, 0)),
        out_shape=jax.ShapeDtypeStruct((N, H * wpad, C), jnp.float32),
        compiler_params=_compiler_params(("parallel", "parallel")),
    )(x_flat, w25, b.reshape(1, C))
    return out.reshape(N, H, wpad, C)[:, :, :W, :]


# ------------------------------------------------------------ layout / conv helpers

def seq_to_nhwc(x, size_2d):
    h, w = size_2d
    L, B, C = x.shape
    return x.reshape(h, w, B, C).transpose(2, 0, 1, 3)


def nhwc_to_seq(x):
    B, h, w, C = x.shape
    return x.reshape(B, h * w, C).transpose(1, 0, 2)


def seq_to_2d(x, size_2d):
    # NCHW layout only kept for the returned memory tensors (torch layout parity).
    h, w = size_2d
    L, B, C = x.shape
    return x.reshape(h, w, B, C).transpose(2, 3, 0, 1)


def conv1x1_nhwc(x, w, b, out_dtype=jnp.float32):
    B, H, W, C = x.shape
    y = pallas_linear(x.reshape(B * H * W, C), w, b, out_dtype=out_dtype)
    return y.reshape(B, H, W, -1)


def conv_gn_nhwc(x, p, groups=8, act="none"):
    if p["ksize"] == 1:
        y = conv1x1_nhwc(x, p["w"], p["b"])
    else:
        y = conv3x3_nhwc(x, p["w"], p["b"])
    return groupnorm_nhwc(y, p["gn_g"], p["gn_b"], groups, act=act)


def res_gn_nhwc(x, p):
    # TODO(synk): ResGN source not provided; reconstructed as x + ConvGN3x3(ReLU(ConvGN3x3(x))).
    r = conv_gn_nhwc(x, p["conv1"], act="relu")
    r = conv_gn_nhwc(r, p["conv2"])
    return x + r


def _interp_matrix(n_in, n_out):
    if n_out == 1 or n_in == 1:
        return jnp.zeros((n_out, n_in), jnp.float32).at[:, 0].set(1.0)
    pos = jnp.arange(n_out, dtype=jnp.float32) * (n_in - 1) / (n_out - 1)
    lo = jnp.floor(pos).astype(jnp.int32)
    hi = jnp.minimum(lo + 1, n_in - 1)
    wgt = pos - lo.astype(jnp.float32)
    return (jax.nn.one_hot(lo, n_in) * (1.0 - wgt)[:, None]
            + jax.nn.one_hot(hi, n_in) * wgt[:, None])


def bilinear_resize_nhwc(x, out_hw):
    # TODO(synk): bilinear (align_corners=True) kept as plain-JAX interpolation matmuls;
    # fuse into a Pallas kernel only if it shows up in profiles.
    B, H, W, C = x.shape
    Ho, Wo = out_hw
    My = _interp_matrix(H, Ho)
    Mx = _interp_matrix(W, Wo)
    y = jnp.einsum('oh,bhwc->bowc', My, x)
    return jnp.einsum('pw,bowc->bopc', Mx, y)


# --------------------------------------------------------- gated propagation blocks

def gated_propagation(Q, K, V, U, p, num_head, d_att, use_linear):
    # TODO(synk): GatedPropagation source not provided; reconstructed from the DeAOT GPM
    # design (multi-head softmax attention, gated by U, output projection).
    if use_linear:
        nqk = d_att * num_head
        fused = seq_linear(Q, p["QKVU"]["w"], p["QKVU"]["b"], out_dtype=jnp.bfloat16)
        dve = (fused.shape[-1] - nqk) // 2
        Q = K = fused[..., :nqk]
        V = jax.nn.silu(fused[..., nqk:nqk + dve])
        U = jax.nn.silu(fused[..., nqk + dve:])
    T = d_att ** 0.5
    Qs = (Q * (1.0 / T)).astype(jnp.bfloat16)
    L, B, _ = Qs.shape
    Lm = K.shape[0]
    hidden = V.shape[-1] // num_head
    Qh = Qs.reshape(L, B, num_head, d_att).transpose(1, 2, 0, 3).reshape(B * num_head, L, d_att)
    Kh = K.astype(jnp.bfloat16).reshape(Lm, B, num_head, d_att).transpose(1, 2, 3, 0)
    Kh = Kh.reshape(B * num_head, d_att, Lm)
    Vh = V.astype(jnp.bfloat16).reshape(Lm, B, num_head, hidden).transpose(1, 2, 0, 3)
    Vh = Vh.reshape(B * num_head, Lm, hidden)
    out = pallas_attention(Qh, Kh, Vh, out_dtype=jnp.bfloat16)
    out = out.reshape(B, num_head, L, hidden).transpose(2, 0, 1, 3).reshape(L, B, num_head * hidden)
    out = out * U
    return seq_linear(out, p["proj"]["w"], p["proj"]["b"], out_dtype=jnp.float32)


def local_gated_propagation(Q, K, V, U, p, num_head, d_att, size_2d, max_dis=7, dilation=1):
    # TODO(synk): LocalGatedPropagation source not provided; reconstructed as windowed
    # attention (window = 2*max_dis+1) with grouped relative-position bias computed
    # in-kernel, depthwise 5x5 conv, gating by U and projection.  Out-of-window keys are
    # masked instead of the correlation-sampler's zero-padding semantics.
    h, w = size_2d
    L, B, _ = Q.shape
    d_vu_exp = V.shape[-1]
    hidden = d_vu_exp // num_head
    winp = p["rel_w"].shape[1] // num_head
    T = d_att ** 0.5
    Qs = (Q * (1.0 / T)).astype(jnp.bfloat16)

    # relative-position logits: one lane-dense block-diagonal matmul over all heads.
    rel_flat = pallas_linear(Qs.reshape(L * B, num_head * d_att), p["rel_w"], p["rel_b"],
                             out_dtype=jnp.bfloat16)
    rel = rel_flat.reshape(L, B, num_head, winp).transpose(1, 2, 0, 3).reshape(B * num_head, L, winp)

    qh = Qs.reshape(L, B, num_head, d_att).transpose(1, 2, 0, 3).reshape(B * num_head, L, d_att)
    kh = K.astype(jnp.bfloat16).reshape(L, B, num_head, d_att).transpose(1, 2, 3, 0)
    kh = kh.reshape(B * num_head, d_att, L)
    vh = V.astype(jnp.bfloat16).reshape(L, B, num_head, hidden).transpose(1, 2, 0, 3)
    vh = vh.reshape(B * num_head, L, hidden)

    agg = pallas_local_attention(qh, kh, vh, rel, h=h, w=w, max_dis=max_dis,
                                 dilation=dilation, out_dtype=jnp.bfloat16)

    agg_nhwc = agg.reshape(B, num_head, L, hidden).transpose(0, 2, 1, 3).reshape(B, h, w, d_vu_exp)
    out_nhwc = pallas_dwconv5x5(agg_nhwc, p["dw_w"], p["dw_b"])
    out = nhwc_to_seq(out_nhwc)
    out = out * U
    return seq_linear(out, p["proj"]["w"], p["proj"]["b"], out_dtype=jnp.float32)


def gpm_layer_forward(p, tgt, tgt_id, curr_id_emb, size_2d, layer_idx,
                      d_model, self_nhead, att_nhead):
    d_att = d_model // 2 if att_nhead == 1 else d_model // att_nhead
    nqk = d_att * att_nhead
    expand_d = 2 * d_model

    _tgt = pallas_layernorm(tgt, p["norm1"]["g"], p["norm1"]["b"], out_dtype=jnp.bfloat16)
    qvu = seq_linear(_tgt, p["QVU"]["w"], p["QVU"]["b"], out_dtype=jnp.bfloat16)
    curr_Q = qvu[..., :nqk]
    curr_K = curr_Q
    curr_V = jax.nn.silu(qvu[..., nqk:nqk + expand_d])
    curr_U = qvu[..., nqk + expand_d:]

    if tgt_id is None:
        tgt_id_in = 0.0
        cat_curr_U = jnp.concatenate([jax.nn.silu(curr_U), jnp.ones_like(curr_U)], axis=-1)
        curr_ID_V = None
    else:
        tgt_id_in = tgt_id
        _tgt_id = pallas_layernorm(tgt_id, p["id_norm1"]["g"], p["id_norm1"]["b"],
                                   out_dtype=jnp.bfloat16)
        curr_ID_V = _tgt_id
        curr_ID_U = seq_linear(_tgt_id, p["ID_U"]["w"], p["ID_U"]["b"], out_dtype=jnp.bfloat16)
        cat_curr_U = jax.nn.silu(jnp.concatenate([curr_U, curr_ID_U], axis=-1))

    # curr_id_emb is provided (memory-building path)
    global_K, global_V = curr_K, curr_V
    if curr_ID_V is None:
        global_ID_V = seq_linear(curr_id_emb.astype(jnp.bfloat16), p["ID_V"]["w"],
                                 p["ID_V"]["b"], act="silu", out_dtype=jnp.bfloat16)
    else:
        global_ID_V = seq_linear(
            jnp.concatenate([curr_ID_V, curr_id_emb.astype(jnp.bfloat16)], axis=2),
            p["ID_V"]["w"], p["ID_V"]["b"], act="silu", out_dtype=jnp.bfloat16)

    cat_global_V = jnp.concatenate([global_V, global_ID_V], axis=-1)

    cat_tgt2 = gated_propagation(curr_Q, global_K, cat_global_V, cat_curr_U, p["lt"],
                                 num_head=att_nhead, d_att=d_att, use_linear=False)
    cat_tgt3 = local_gated_propagation(curr_Q, global_K, cat_global_V, cat_curr_U, p["st"],
                                       num_head=att_nhead, d_att=d_att, size_2d=size_2d)

    tgt2, tgt_id2 = jnp.split(cat_tgt2, 2, axis=-1)
    tgt3, tgt_id3 = jnp.split(cat_tgt3, 2, axis=-1)
    tgt = tgt + (tgt2 + tgt3)                      # lst_dropout / droppath identity at inference
    tgt_id_out = tgt_id_in + (tgt_id2 + tgt_id3)

    _tgt = pallas_layernorm(tgt, p["norm2"]["g"], p["norm2"]["b"], out_dtype=jnp.bfloat16)
    _tgt_id = pallas_layernorm(tgt_id_out, p["id_norm2"]["g"], p["id_norm2"]["b"],
                               out_dtype=jnp.bfloat16)
    q = jnp.concatenate([_tgt, _tgt_id], axis=-1)
    cat_self = gated_propagation(q, q, q, q, p["self"],
                                 num_head=self_nhead, d_att=d_att, use_linear=True)
    tgt2, tgt_id2 = jnp.split(cat_self, 2, axis=-1)
    tgt = tgt + tgt2
    tgt_id_out = tgt_id_out + tgt_id2

    local_K = seq_to_2d(global_K, size_2d)
    local_V = seq_to_2d(global_V, size_2d)
    local_ID_V = seq_to_2d(global_ID_V, size_2d)
    memories = [[curr_K, curr_V, None, curr_ID_V],
                [global_K, global_V, None, global_ID_V],
                [local_K, local_V, None, local_ID_V]]
    return tgt, tgt_id_out, memories


# -------------------------------------------------------------- top-level forward

def msdualbranch_gpm_v2_forward(P, tgt, tgt_8, tgt_4, curr_id_emb, size_2d,
                                num_layers=2, d_model=256, self_nhead=8, att_nhead=8):
    output = tgt                   # emb_dropout(p=0) -> identity
    output_id = None
    intermediate, tmp_output, tmp_output_id, tmp_memories = [], [], [], []

    for idx in range(num_layers):
        output, output_id, memories = gpm_layer_forward(
            P["layers"][idx], output, output_id, curr_id_emb[0], size_2d[0],
            layer_idx=idx, d_model=d_model, self_nhead=self_nhead, att_nhead=att_nhead)
        intermediate.append(jnp.concatenate([output, output_id], axis=2))
        tmp_output.append(output)
        tmp_output_id.append(output_id)
        tmp_memories.append(memories)

    # 2-D consolidation branch stays NHWC end-to-end (no NCHW round trips)
    tmp_output = [seq_to_nhwc(t, size_2d[0]) for t in tmp_output]
    tmp_output_id = [seq_to_nhwc(t, size_2d[0]) for t in tmp_output_id]

    x_output = jnp.concatenate(tmp_output, axis=-1)
    x_output = conv_gn_nhwc(x_output, P["s8_cons_in"], act="relu")
    x_output = bilinear_resize_nhwc(x_output, size_2d[1])
    tgt_8p = conv1x1_nhwc(jnp.transpose(tgt_8, (0, 2, 3, 1)), P["s8_proj"]["w"], P["s8_proj"]["b"])
    x_output = jax.nn.relu(res_gn_nhwc(tgt_8p + x_output, P["s8_cons_out"]))

    x_output_id = jnp.concatenate(tmp_output_id, axis=-1)
    x_output_id = conv_gn_nhwc(x_output_id, P["s8_cons_in_id"], act="relu")
    x_output_id = bilinear_resize_nhwc(x_output_id, size_2d[1])
    x_output_id = jax.nn.relu(res_gn_nhwc(tgt_8p + x_output_id, P["s8_cons_out_id"]))

    x_output = nhwc_to_seq(x_output)
    x_output_id = nhwc_to_seq(x_output_id)

    x_output, x_output_id, memories = gpm_layer_forward(
        P["layer_s8"], x_output, x_output_id, curr_id_emb[1], size_2d[1],
        layer_idx=3, d_model=128, self_nhead=self_nhead, att_nhead=att_nhead)
    s8_memories = [memories]

    output, output_id = x_output, x_output_id
    x_output = seq_to_nhwc(output, size_2d[1])
    x_output_id = seq_to_nhwc(output_id, size_2d[1])

    x_output = conv_gn_nhwc(x_output, P["s4_cons_in"], act="relu")
    x_output = bilinear_resize_nhwc(x_output, size_2d[2])
    tgt_4p = conv1x1_nhwc(jnp.transpose(tgt_4, (0, 2, 3, 1)), P["s4_proj"]["w"], P["s4_proj"]["b"])
    x_output = jax.nn.relu(res_gn_nhwc(tgt_4p + x_output, P["s4_cons_out"]))

    x_output_id = conv_gn_nhwc(x_output_id, P["s4_cons_in_id"], act="relu")
    x_output_id = bilinear_resize_nhwc(x_output_id, size_2d[2])
    x_output_id = jax.nn.relu(res_gn_nhwc(tgt_4p + x_output_id, P["s4_cons_out_id"]))

    x_output = nhwc_to_seq(x_output)
    x_output_id = nhwc_to_seq(x_output_id)
    cat_output_s4 = jnp.concatenate([x_output, x_output_id], axis=2)

    # final_norm + intermediate_norm (return_intermediate=True path of the torch module)
    cat_output_s4 = groupnorm_1d(cat_output_s4, P["decoder_norms_s4"][-1]["g"],
                                 P["decoder_norms_s4"][-1]["b"], groups=2)
    intermediate.append(cat_output_s4)
    for idx in range(len(intermediate) - 1):
        intermediate[idx] = groupnorm_1d(intermediate[idx],
                                         P["decoder_norms"][idx]["g"],
                                         P["decoder_norms"][idx]["b"], groups=2)

    intermediate_memories = tmp_memories + s8_memories
    return intermediate, intermediate_memories


# ------------------------------------------------------------------- parameters

class KeyGen:
    def __init__(self, seed):
        self._key = jax.random.PRNGKey(seed)

    def __call__(self):
        self._key, sub = jax.random.split(self._key)
        return sub


def xavier_uniform(key, shape, fan_in, fan_out):
    a = math.sqrt(6.0 / (fan_in + fan_out))
    return jax.random.uniform(key, shape, jnp.float32, -a, a)


def make_linear_p(kg, din, dout):
    # weights stored bf16 (MXU operand dtype); bias stays f32.
    return {"w": xavier_uniform(kg(), (din, dout), din, dout).astype(jnp.bfloat16),
            "b": jnp.zeros((dout,), jnp.float32)}


def fuse_linear_p(*ps):
    return {"w": jnp.concatenate([p["w"] for p in ps], axis=1),
            "b": jnp.concatenate([p["b"] for p in ps], axis=0)}


def make_norm_p(dim):
    return {"g": jnp.ones((dim,), jnp.float32), "b": jnp.zeros((dim,), jnp.float32)}


def make_gpm_params(kg, d_model, self_nhead, att_nhead, layer_idx, max_dis=7):
    d_att = d_model // 2 if att_nhead == 1 else d_model // att_nhead
    expand_d = 2 * d_model
    d_vu = 2 * d_model
    d_vu_exp = 2 * d_vu
    win = 2 * max_dis + 1
    win2 = win * win
    winp = _round_up(win2, 128)                 # 225 -> 256: lane-dense rel matmul output
    QV = make_linear_p(kg, d_model, d_att * att_nhead + expand_d)
    U = make_linear_p(kg, d_model, expand_d)
    self_QK = make_linear_p(kg, d_vu, d_att * self_nhead)
    self_V = make_linear_p(kg, d_vu, d_vu_exp)
    self_U = make_linear_p(kg, d_vu, d_vu_exp)
    # block-diagonal relative-position weight -> a single full-depth matmul over all heads
    rel_w = jnp.zeros((att_nhead * d_att, att_nhead * winp), jnp.float32)
    for hd in range(att_nhead):
        blk = xavier_uniform(kg(), (d_att, win2), d_att, win2)
        rel_w = rel_w.at[hd * d_att:(hd + 1) * d_att, hd * winp:hd * winp + win2].set(blk)
    p = {
        "norm1": make_norm_p(d_model),
        "norm2": make_norm_p(d_model),
        "id_norm2": make_norm_p(d_model),
        "QVU": fuse_linear_p(QV, U),                 # fused linear_QV + linear_U
        "lt": {"proj": make_linear_p(kg, d_vu_exp, d_vu)},
        "st": {
            "rel_w": rel_w.astype(jnp.bfloat16),
            "rel_b": jnp.zeros((att_nhead * winp,), jnp.float32),
            "dw_w": xavier_uniform(kg(), (25, d_vu_exp), 25, 25).astype(jnp.bfloat16),
            "dw_b": jnp.zeros((d_vu_exp,), jnp.float32),
            "proj": make_linear_p(kg, d_vu_exp, d_vu),
        },
        "self": {"QKVU": fuse_linear_p(self_QK, self_V, self_U),  # fused QK + V + U
                 "proj": make_linear_p(kg, d_vu_exp, d_vu)},
    }
    if layer_idx == 0:
        p["ID_V"] = make_linear_p(kg, d_model, expand_d)
    else:
        p["id_norm1"] = make_norm_p(d_model)
        p["ID_V"] = make_linear_p(kg, 2 * d_model, expand_d)
        p["ID_U"] = make_linear_p(kg, d_model, expand_d)
    return p


def make_convgn_p(kg, cin, cout, ksize):
    # TODO(synk): tap-major (9, cin, cout) weight layout must be matched when loading
    # real PyTorch [cout, cin, kh, kw] checkpoints.
    if ksize == 1:
        w = xavier_uniform(kg(), (cin, cout), cin, cout).astype(jnp.bfloat16)
    else:
        w = xavier_uniform(kg(), (9, cin, cout), cin * 9, cout).astype(jnp.bfloat16)
    return {"ksize": ksize, "w": w,
            "b": jnp.zeros((cout,), jnp.float32),
            "gn_g": jnp.ones((cout,), jnp.float32),
            "gn_b": jnp.zeros((cout,), jnp.float32)}


def make_resgn_p(kg, cin, cout):
    return {"conv1": make_convgn_p(kg, cin, cout, 3),
            "conv2": make_convgn_p(kg, cout, cout, 3)}


def make_model_params(seed, num_layers, d_model, self_nhead, att_nhead, encoder_dim):
    kg = KeyGen(seed)
    return {
        "layers": [make_gpm_params(kg, d_model, self_nhead, att_nhead, idx)
                   for idx in range(num_layers)],
        "layer_s8": make_gpm_params(kg, 128, self_nhead, att_nhead, 3),
        "s8_cons_in": make_convgn_p(kg, d_model * num_layers, 128, 1),
        "s8_cons_in_id": make_convgn_p(kg, d_model * num_layers, 128, 1),
        "s8_cons_out": make_resgn_p(kg, 128, 128),
        "s8_cons_out_id": make_resgn_p(kg, 128, 128),
        "s8_proj": make_linear_p(kg, encoder_dim[1], 128),
        "s4_cons_in": make_convgn_p(kg, 128, 64, 1),
        "s4_cons_in_id": make_convgn_p(kg, 128, 64, 1),
        "s4_cons_out": make_resgn_p(kg, 64, 64),
        "s4_cons_out_id": make_resgn_p(kg, 64, 64),
        "s4_proj": make_linear_p(kg, encoder_dim[0], 64),
        "decoder_norms": [make_norm_p(d_model * 2) for _ in range(num_layers)],
        "decoder_norms_s4": [make_norm_p(128) for _ in range(num_layers)],
    }


# ------------------------------------------------------------------------ main

if __name__ == "__main__":
    num_layers = 2
    d_model = 256              # hard-wired by the s8/s4 consolidation convs in the torch module
    self_nhead = att_nhead = 8
    encoder_dim = (32, 48)
    bs = 2
    size_2d = [(4, 4), (8, 8), (16, 16)]    # (s16, s8, s4) spatial sizes

    P = make_model_params(0, num_layers, d_model, self_nhead, att_nhead, encoder_dim)

    key = jax.random.PRNGKey(0)
    k1, k2, k3, k4, k5 = jax.random.split(key, 5)
    L0 = size_2d[0][0] * size_2d[0][1]
    L1 = size_2d[1][0] * size_2d[1][1]
    tgt = jax.random.normal(k1, (L0, bs, d_model), jnp.float32)
    tgt_8 = jax.random.normal(k2, (bs, encoder_dim[1], size_2d[1][0], size_2d[1][1]), jnp.float32)
    tgt_4 = jax.random.normal(k3, (bs, encoder_dim[0], size_2d[2][0], size_2d[2][1]), jnp.float32)
    curr_id_emb = [jax.random.normal(k4, (L0, bs, d_model), jnp.float32),
                   jax.random.normal(k5, (L1, bs, 128), jnp.float32)]

    intermediate, memories = msdualbranch_gpm_v2_forward(
        P, tgt, tgt_8, tgt_4, curr_id_emb, size_2d,
        num_layers=num_layers, d_model=d_model,
        self_nhead=self_nhead, att_nhead=att_nhead)

    for t in intermediate:
        jax.block_until_ready(t)
    assert all(bool(jnp.all(jnp.isfinite(t))) for t in intermediate)
    print("KERNEL_OK")
</pallas_src>

<mosaic_0001>
module attributes {stable_mosaic.version = 11 : i64} {
  func.func @_layernorm_kernel(%arg0: i32, %arg1: memref<32x256xf32, #tpu.memory_space<vmem>>, %arg2: memref<1x256xf32, #tpu.memory_space<vmem>>, %arg3: memref<1x256xf32, #tpu.memory_space<vmem>>, %arg4: memref<32x256xbf16, #tpu.memory_space<vmem>>) attributes {dimension_semantics = [#tpu.dimension_semantics<parallel>], iteration_bounds = array<i64: 1>, scalar_prefetch = 0 : i64, scratch_operands = 0 : i64, tpu.core_type = #tpu.core_type<tc>, window_params = [{transform_indices = @transform_0, window_bounds = array<i64: 32, 256>}, {pipeline_mode = #tpu.pipeline_mode<synchronous>, transform_indices = @transform_1, window_bounds = array<i64: 1, 256>}, {pipeline_mode = #tpu.pipeline_mode<synchronous>, transform_indices = @transform_2, window_bounds = array<i64: 1, 256>}, {transform_indices = @transform_3, window_bounds = array<i64: 32, 256>}]} {
    %c0 = arith.constant 0 : index
    %c0_0 = arith.constant 0 : index
    %0 = vector.load %arg1[%c0, %c0_0] : memref<32x256xf32, #tpu.memory_space<vmem>>, vector<32x256xf32>
    %cst = arith.constant dense<0.000000e+00> : vector<32xf32>
    %1 = vector.multi_reduction <add>, %0, %cst [1] : vector<32x256xf32> to vector<32xf32>
    %2 = vector.shape_cast %1 : vector<32xf32> to vector<32x1xf32>
    %cst_1 = arith.constant 2.560000e+02 : f32
    %3 = vector.broadcast %cst_1 : f32 to vector<32x1xf32>
    %4 = arith.divf %2, %3 : vector<32x1xf32>
    %5 = vector.broadcast %4 : vector<32x1xf32> to vector<32x256xf32>
    %6 = arith.subf %0, %5 : vector<32x256xf32>
    %7 = arith.mulf %6, %6 : vector<32x256xf32>
    %cst_2 = arith.constant dense<0.000000e+00> : vector<32xf32>
    %8 = vector.multi_reduction <add>, %7, %cst_2 [1] : vector<32x256xf32> to vector<32xf32>
    %9 = vector.shape_cast %8 : vector<32xf32> to vector<32x1xf32>
    %cst_3 = arith.constant 2.560000e+02 : f32
    %10 = vector.broadcast %cst_3 : f32 to vector<32x1xf32>
    %11 = arith.divf %9, %10 : vector<32x1xf32>
    %12 = vector.broadcast %4 : vector<32x1xf32> to vector<32x256xf32>
    %13 = arith.subf %0, %12 : vector<32x256xf32>
    %cst_4 = arith.constant 9.99999974E-6 : f32
    %14 = vector.broadcast %cst_4 : f32 to vector<32x1xf32>
    %15 = arith.addf %11, %14 : vector<32x1xf32>
    %16 = math.rsqrt %15 : vector<32x1xf32>
    %17 = vector.broadcast %16 : vector<32x1xf32> to vector<32x256xf32>
    %18 = arith.mulf %13, %17 : vector<32x256xf32>
    %c0_5 = arith.constant 0 : index
    %c0_6 = arith.constant 0 : index
    %19 = vector.load %arg2[%c0_5, %c0_6] : memref<1x256xf32, #tpu.memory_space<vmem>>, vector<1x256xf32>
    %20 = vector.broadcast %19 : vector<1x256xf32> to vector<32x256xf32>
    %21 = arith.mulf %18, %20 : vector<32x256xf32>
    %c0_7 = arith.constant 0 : index
    %c0_8 = arith.constant 0 : index
    %22 = vector.load %arg3[%c0_7, %c0_8] : memref<1x256xf32, #tpu.memory_space<vmem>>, vector<1x256xf32>
    %23 = vector.broadcast %22 : vector<1x256xf32> to vector<32x256xf32>
    %24 = arith.addf %21, %23 : vector<32x256xf32>
    %25 = arith.truncf %24 : vector<32x256xf32> to vector<32x256xbf16>
    %c0_9 = arith.constant 0 : index
    %c0_10 = arith.constant 0 : index
    %26 = vector.load %arg4[%c0_9, %c0_10] : memref<32x256xbf16, #tpu.memory_space<vmem>>, vector<32x256xbf16>
    tpu.vector_store %arg4[%c0_9, %c0_10], %25 {strides = array<i32>} : memref<32x256xbf16, #tpu.memory_space<vmem>>, vector<32x256xbf16>,
    return
  }
  func.func @transform_0(%arg0: i32) -> (i32, i32) {
    %c0_i32 = arith.constant 0 : i32
    %c0_i32_0 = arith.constant 0 : i32
    return %arg0, %c0_i32 : i32, i32
  }
  func.func @transform_1(%arg0: i32) -> (i32, i32) {
    %c0_i32 = arith.constant 0 : i32
    %c0_i32_0 = arith.constant 0 : i32
    %c0_i32_1 = arith.constant 0 : i32
    return %c0_i32, %c0_i32_0 : i32, i32
  }
  func.func @transform_2(%arg0: i32) -> (i32, i32) {
    %c0_i32 = arith.constant 0 : i32
    %c0_i32_0 = arith.constant 0 : i32
    %c0_i32_1 = arith.constant 0 : i32
    return %c0_i32, %c0_i32_0 : i32, i32
  }
  func.func @transform_3(%arg0: i32) -> (i32, i32) {
    %c0_i32 = arith.constant 0 : i32
    %c0_i32_0 = arith.constant 0 : i32
    return %arg0, %c0_i32 : i32, i32
  }
}

</mosaic_0001>

<bundles_post_ra>
// kernel: tpu_custom_call.1
= control target key start
LH: loop header
LB: loop body
LE: loop exit
PB: predicated region body
PF: predicated region fallthrough
CT: control target
= control target key end

     0   :  { %8 = vsyncpa [#allocation3], 0  ;;  %s431_s0 = inlined_call_operand.hbm [shape: f32[32,256], index: 0, kind: input, shape index: {}]   ;;  %s432_s1 = inlined_call_operand.hbm [shape: f32[1,256], index: 1, kind: input, shape index: {}]   ;;  %s433_s2 = inlined_call_operand.hbm [shape: f32[1,256], index: 2, kind: input, shape index: {}]   ;;  %s434_s3 = inlined_call_operand.hbm [shape: bf16[32,256], index: 3, kind: output, shape index: {}]  }
   0x1   :  { %9 = vsyncpa [#allocation6], 0  ;;  %s29_s14 = sshll.u32 %s432_s1, 4  ;;  %s30_s14 = int_to_ptr.hbm [resolvable:$true] %s29_s14 }
   0x2   :  { %10 = vsyncpa [#allocation4], 0  ;;  %s350_s15 = smov [#allocation5]   ;;  %s15_s19 = sshll.u32 %s431_s0, 4  ;;  %s16_s19 = int_to_ptr.hbm [resolvable:$true] %s15_s19 }
   0x3   :  { %s31_s16 = sshll.u32 %s350_s15, 4  ;;  %s351_s20 = smov [#allocation2]   ;;  %s32_s16 = int_to_ptr.vmem [resolvable:$true] %s31_s16 }
   0x4   :  { %34 = dma.hbm_to_vmem [thread:$0]  %s30_s14, 32, %s32_s16, [#allocation6]  }
   0x5   :  { %s17_s21 = sshll.u32 %s351_s20, 4  ;;  %s352_s22 = smov 256   ;;  %s18_s21 = int_to_ptr.vmem [resolvable:$true] %s17_s21 }
   0x6   :  { %s353_s23 = smov 16   ;;  %s40_s1 = sshll.u32 %s433_s2, 4  ;;  %s41_s1 = int_to_ptr.hbm [resolvable:$true] %s40_s1 }
   0x7   :  { %23 = dma.hbm_to_vmem [thread:$0]  %s16_s19, 1024, %s18_s21, [#allocation3], %s352_s22, %s352_s22, %s353_s23  }
   0x8   :  { %s354_s26 = smov [#allocation7]  }
   0x9   :  { %s42_s27 = sshll.u32 %s354_s26, 4  ;;  %s43_s27 = int_to_ptr.vmem [resolvable:$true] %s42_s27 }
   0xa   :  { %45 = dma.hbm_to_vmem [thread:$0]  %s41_s1, 32, %s43_s27, [#allocation6]  }
   0xb   :  { %344 = dma.done.wait [#allocation3], 1024  }
   0xc   :  { %345 = vsyncadd [#allocation3], 4294966272 }
   0xd   :  { %346 = dma.done.wait [#allocation6], 64  }
   0xe   :  { %347 = vsyncadd [#allocation6], 4294967232  ;;  %v62_v0 = vld [vmem:[#allocation2 + $0x20] sm:$0xff]  ;;  %v63_v1 = vld [vmem:[#allocation2 + $0x28] sm:$0xff]  ;;  %v355_v12 = vmov 256.0   ;;  %s356_s0 = smov [#allocation8]  }
   0xf   :  { %v58_v2 = vld [vmem:[#allocation2] sm:$0xff]  ;;  %v72_v3 = vadd.f32 %v63_v1, %v62_v0  ;;  %v59_v4 = vld [vmem:[#allocation2 + $0x8] sm:$0xff]  ;;  %v64_v6 = vld [vmem:[#allocation2 + $0x30] sm:$0xff]  ;;  %238 = vrcp.f32 %v355_v12  ;;  %s213_s2 = sshll.u32 %s356_s0, 4  ;;  %s215_s30 = sshll.u32 %s434_s3, 4  ;;  %s214_s2 = int_to_ptr.vmem [resolvable:$true] %s213_s2  ;;  %s216_s30 = int_to_ptr.hbm [resolvable:$true] %s215_s30 }
  0x10   :  { %v66_v5 = vadd.f32 %v59_v4, %v58_v2  ;;  %v65_v7 = vld [vmem:[#allocation2 + $0x38] sm:$0xff]  ;;  %v60_v8 = vld [vmem:[#allocation2 + $0x10] sm:$0xff]  ;;  %s357_s4 = smov 128   ;;  %s358_s5 = smov 8  }
  0x11   :  { %73 = vadd.xlane.f32.xlu1 %v72_v3  ;;  %v61_v9 = vld [vmem:[#allocation2 + $0x18] sm:$0xff]  ;;  %v75_v10 = vadd.f32 %v65_v7, %v64_v6 }
  0x12   :  { %67 = vadd.xlane.f32.xlu0 %v66_v5  ;;  %v69_v11 = vadd.f32 %v61_v9, %v60_v8 }
  0x15   :  { %v239_v13 = vpop.eup %238 }
  0x16   :  { %v79_v14 = vmul.f32 256.0, %v239_v13  ;;  %vm83_vm0 = vweird.f32 %v239_v13 }
  0x18   :  { %v80_v15 = vsub.f32 1.0, %v79_v14 }
  0x19   :  { %76 = vadd.xlane.f32.xlu1 %v75_v10 }
  0x1a   :  { %70 = vadd.xlane.f32.xlu0 %v69_v11  ;;  %v81_v16 = vmul.f32 %v239_v13, %v80_v15 }
  0x1c   :  { %v82_v17 = vadd.f32 %v239_v13, %v81_v16 }
  0x1e   :  { %v84_v18 = vsel %vm83_vm0, %v239_v13, %v82_v17 }
  0x84   :  { %v74_v19 = vpop.xlane.xlu1 %73 }
  0x85   :  { %v87_v20 = vmul.f32 %v84_v18, %v74_v19  ;;  %v68_v21 = vpop.xlane.xlu0 %67 }
  0x86   :  { %v85_v22 = vmul.f32 %v84_v18, %v68_v21 }
  0x87   :  { %v388_v23 = vsub.f32 %v62_v0, %v87_v20  ;;  %v390_v24 = vsub.f32 %v63_v1, %v87_v20 }
  0x88   :  { %v392_v25 = vsub.f32 %v58_v2, %v85_v22  ;;  %v394_v26 = vsub.f32 %v59_v4, %v85_v22  ;;  %v173_v2 = vld [vmem:[#allocation5] sm:$0x3] }
  0x89   :  { %v101_v27 = vmul.f32 %v388_v23, %v388_v23  ;;  %v102_v28 = vmul.f32 %v390_v24, %v390_v24  ;;  %v176_v12 = vperm.slane %v173_v2, 1 }
  0x8a   :  { %v97_v29 = vmul.f32 %v392_v25, %v392_v25  ;;  %v98_v30 = vmul.f32 %v394_v26, %v394_v26 }
  0x8b   :  { %v111_v31 = vadd.f32 %v102_v28, %v101_v27 }
  0x8c   :  { %v77_v32 = vpop.xlane.xlu1 %76  ;;  %v105_v33 = vadd.f32 %v98_v30, %v97_v29 }
  0x8d   :  { %v88_v34 = vmul.f32 %v84_v18, %v77_v32  ;;  %v71_v35 = vpop.xlane.xlu0 %70  ;;  %112 = vadd.xlane.f32.xlu0 %v111_v31 }
  0x8e   :  { %v86_v36 = vmul.f32 %v84_v18, %v71_v35  ;;  %106 = vadd.xlane.f32.xlu2 %v105_v33 }
  0x8f   :  { %v404_v37 = vsub.f32 %v64_v6, %v88_v34  ;;  %v406_v38 = vsub.f32 %v65_v7, %v88_v34  ;;  %v187_v6 = vld [vmem:[#allocation7] sm:$0x3] }
  0x90   :  { %v408_v39 = vsub.f32 %v60_v8, %v86_v36  ;;  %v410_v40 = vsub.f32 %v61_v9, %v86_v36  ;;  %v175_v9 = vperm.slane %v173_v2, 0  ;;  %v189_v15 = vperm.slane %v187_v6, 0 }
  0x91   :  { %v103_v41 = vmul.f32 %v404_v37, %v404_v37  ;;  %v104_v42 = vmul.f32 %v406_v38, %v406_v38  ;;  %v190_v16 = vperm.slane %v187_v6, 1 }
  0x92   :  { %v99_v43 = vmul.f32 %v408_v39, %v408_v39  ;;  %v100_v44 = vmul.f32 %v410_v40, %v410_v40 }
  0x93   :  { %v114_v45 = vadd.f32 %v104_v42, %v103_v41 }
  0x94   :  { %v108_v46 = vadd.f32 %v100_v44, %v99_v43 }
  0x95   :  { %115 = vadd.xlane.f32.xlu1 %v114_v45 }
  0x96   :  { %109 = vadd.xlane.f32.xlu2 %v108_v46 }
 0x100   :  { %v113_v47 = vpop.xlane.xlu0 %112 }
 0x101   :  { %v107_v48 = vpop.xlane.xlu2 %106  ;;  %v119_v49 = vmul.f32 %v113_v47, %v84_v18 }
 0x102   :  { %v117_v50 = vmul.f32 %v107_v48, %v84_v18 }
 0x103   :  { %v123_v51 = vadd.f32 1e-05, %v119_v49 }
 0x104   :  { %v121_v52 = vadd.f32 1e-05, %v117_v50 }
 0x105   :  { %240 = vrsqrt.f32 %v123_v51  ;;  %vm151_vm3 = vweird.f32 %v123_v51 }
 0x106   :  { %242 = vrsqrt.f32 %v121_v52  ;;  %vm131_vm4 = vweird.f32 %v121_v52 }
 0x108   :  { %v116_v53 = vpop.xlane.xlu1 %115 }
 0x109   :  { %v120_v54 = vmul.f32 %v116_v53, %v84_v18  ;;  %v110_v55 = vpop.xlane.xlu2 %109 }
 0x10a   :  { %v118_v56 = vmul.f32 %v110_v55, %v84_v18 }
 0x10b   :  { %v241_v57 = vpop.eup %240  ;;  %v124_v58 = vadd.f32 1e-05, %v120_v54 }
 0x10c   :  { %v243_v59 = vpop.eup %242  ;;  %v146_v60 = vmul.f32 %v241_v57, %v123_v51  ;;  %v122_v61 = vadd.f32 1e-05, %v118_v56  ;;  %vm152_vm1 = vweird.f32 %v241_v57 }
 0x10d   :  { %v126_v62 = vmul.f32 %v243_v59, %v121_v52  ;;  %244 = vrsqrt.f32 %v124_v58  ;;  %vm132_vm2 = vweird.f32 %v243_v59  ;;  %vm153_vm5 = vmor %vm151_vm3, %vm152_vm1  ;;  %vm161_vm9 = vweird.f32 %v124_v58 }
 0x10e   :  { %v147_v63 = vmul.f32 %v241_v57, %v146_v60  ;;  %246 = vrsqrt.f32 %v122_v61  ;;  %vm133_vm6 = vmor %vm131_vm4, %vm132_vm2  ;;  %vm141_vm11 = vweird.f32 %v122_v61 }
 0x10f   :  { %v127_v0 = vmul.f32 %v243_v59, %v126_v62 }
 0x110   :  { %v148_v1 = vmul.f32 0.5, %v147_v63 }
 0x111   :  { %v128_v3 = vmul.f32 0.5, %v127_v0 }
 0x112   :  { %v149_v4 = vsub.f32 1.5, %v148_v1 }
 0x113   :  { %v245_v5 = vpop.eup %244  ;;  %v129_v7 = vsub.f32 1.5, %v128_v3 }
 0x114   :  { %v247_v8 = vpop.eup %246  ;;  %v150_v10 = vmul.f32 %v241_v57, %v149_v4  ;;  %v156_v11 = vmul.f32 %v245_v5, %v124_v58  ;;  %vm162_vm7 = vweird.f32 %v245_v5 }
 0x115   :  { %v130_v13 = vmul.f32 %v243_v59, %v129_v7  ;;  %v136_v14 = vmul.f32 %v247_v8, %v122_v61  ;;  %vm142_vm8 = vweird.f32 %v247_v8  ;;  %vm163_vm10 = vmor %vm161_vm9, %vm162_vm7 }
 0x116   :  { %v154_v17 = vsel %vm153_vm5, %v241_v57, %v150_v10  ;;  %v157_v18 = vmul.f32 %v245_v5, %v156_v11  ;;  %vm143_vm12 = vmor %vm141_vm11, %vm142_vm8 }
 0x117   :  { %v134_v19 = vsel %vm133_vm6, %v243_v59, %v130_v13  ;;  %v169_v20 = vmul.f32 %v154_v17, %v388_v23  ;;  %v170_v21 = vmul.f32 %v154_v17, %v390_v24  ;;  %v137_v22 = vmul.f32 %v247_v8, %v136_v14 }
 0x118   :  { %v165_v27 = vmul.f32 %v134_v19, %v392_v25  ;;  %v166_v28 = vmul.f32 %v134_v19, %v394_v26  ;;  %v158_v29 = vmul.f32 0.5, %v157_v18 }
 0x119   :  { %v183_v30 = vmul.f32 %v175_v9, %v169_v20  ;;  %v184_v31 = vmul.f32 %v176_v12, %v170_v21  ;;  %v138_v32 = vmul.f32 0.5, %v137_v22 }
 0x11a   :  { %v179_v33 = vmul.f32 %v175_v9, %v165_v27  ;;  %v180_v34 = vmul.f32 %v176_v12, %v166_v28  ;;  %v159_v35 = vsub.f32 1.5, %v158_v29 }
 0x11b   :  { %v197_v36 = vadd.f32 %v189_v15, %v183_v30  ;;  %v198_v41 = vadd.f32 %v190_v16, %v184_v31  ;;  %v139_v42 = vsub.f32 1.5, %v138_v32 }
 0x11c   :  { %v193_v23 = vadd.f32 %v189_v15, %v179_v33  ;;  %v194_v43 = vadd.f32 %v190_v16, %v180_v34  ;;  %v160_v24 = vmul.f32 %v245_v5, %v159_v35 }
 0x11d   :  { %v203_v44 = vpack.c.bf16 %v198_v41, %v197_v36  ;;  %v140_v25 = vmul.f32 %v247_v8, %v139_v42 }
 0x11e   :  { %v201_v26 = vpack.c.bf16 %v194_v43, %v193_v23  ;;  %v164_v45 = vsel %vm163_vm10, %v245_v5, %v160_v24 }
 0x11f   :  { %207 = vst [vmem:[#allocation8 + $0x10] sm:$0xff] %v203_v44  ;;  %v171_v46 = vmul.f32 %v164_v45, %v404_v37  ;;  %v172_v47 = vmul.f32 %v164_v45, %v406_v38  ;;  %v144_v48 = vsel %vm143_vm12, %v247_v8, %v140_v25 }
 0x120   :  { %205 = vst [vmem:[#allocation8] sm:$0xff] %v201_v26  ;;  %v167_v49 = vmul.f32 %v144_v48, %v408_v39  ;;  %v168_v50 = vmul.f32 %v144_v48, %v410_v40 }
 0x121   :  { %v185_v51 = vmul.f32 %v175_v9, %v171_v46  ;;  %v186_v52 = vmul.f32 %v176_v12, %v172_v47 }
 0x122   :  { %v181_v53 = vmul.f32 %v175_v9, %v167_v49  ;;  %v182_v54 = vmul.f32 %v176_v12, %v168_v50 }
 0x123   :  { %v199_v55 = vadd.f32 %v189_v15, %v185_v51  ;;  %v200_v37 = vadd.f32 %v190_v16, %v186_v52 }
 0x124   :  { %v195_v56 = vadd.f32 %v189_v15, %v181_v53  ;;  %v196_v38 = vadd.f32 %v190_v16, %v182_v54 }
 0x125   :  { %v204_v57 = vpack.c.bf16 %v200_v37, %v199_v55 }
 0x126   :  { %v202_v39 = vpack.c.bf16 %v196_v38, %v195_v56 }
 0x127   :  { %208 = vst [vmem:[#allocation8 + $0x18] sm:$0xff] %v204_v57 }
 0x128   :  { %206 = vst [vmem:[#allocation8 + $0x8] sm:$0xff] %v202_v39 }
 0x129   :  { %221 = dma.vmem_to_hbm [thread:$0]  %s214_s2, 512, %s216_s30, [#allocation4], %s357_s4, %s357_s4, %s358_s5  }
 0x12a   :  { %348 = dma.done.wait [#allocation4], 512  }
 0x12b   :  { %349 = vsyncadd [#allocation4], 4294966784 }
 0x12c   :  { %226 = vsyncpa [#allocation3], 1 }
 0x12d   :  { %227 = vsyncpa [#allocation6], 1 }
 0x12e   :  { %228 = vsyncpa [#allocation4], 1 }

</bundles_post_ra>
